<compile_context>
chip_gen: v7x
topology: tpu7x:2x2x1
jax: 0.10.0
libtpu: 0.0.40
codegen_flags: <defaults>
</compile_context>

<pallas_src>
import jax
import jax.numpy as jnp
from jax.experimental import pallas as pl
from jax.experimental.pallas import tpu as pltpu

EPS = 1e-5


def _round_up(x, m):
    return ((x + m - 1) // m) * m


def _sublane_multiple(dtype):
    # Native sublane packing: 8 for 4-byte, 16 for 2-byte, 32 for 1-byte dtypes.
    return {4: 8, 2: 16, 1: 32}.get(jnp.dtype(dtype).itemsize, 8)


def feature_encoder_kernel(x_ref, w_ref, b_ref, o_ref):
    # Pure bias-fused matmul (BN already folded into W'/b' in the wrapper).
    y = jnp.dot(x_ref[...], w_ref[...], preferred_element_type=jnp.float32)
    o_ref[...] = (y + b_ref[...].astype(jnp.float32)).astype(o_ref.dtype)


def feature_encoder(x, w, b, gamma, beta, running_mean, running_var, *, tn=1024):
    N, Din = x.shape
    Dout = w.shape[1]
    out_dtype = x.dtype

    # ---- Fold BatchNorm (inference) + bias into the weights (always in f32). ----
    scale = gamma.astype(jnp.float32) * jax.lax.rsqrt(
        running_var.astype(jnp.float32) + EPS)                       # (1, Dout)
    w_fold = w.astype(jnp.float32) * scale                           # column-wise scale
    b_fold = (b.astype(jnp.float32) - running_mean.astype(jnp.float32)) * scale \
        + beta.astype(jnp.float32)                                   # (1, Dout)

    # bf16 activations -> keep the folded params (and output) in bf16 to halve HBM traffic.
    if jnp.dtype(out_dtype) == jnp.bfloat16:
        w_fold = w_fold.astype(jnp.bfloat16)
        b_fold = b_fold.astype(jnp.bfloat16)

    # ---- Conditional lane padding: only pad Dout when it is > 128 and ragged. ----
    if Dout > 128 and Dout % 128 != 0:
        Dout_p = _round_up(Dout, 128)
        w_fold = jnp.pad(w_fold, ((0, 0), (0, Dout_p - Dout)))
        b_fold = jnp.pad(b_fold, ((0, 0), (0, Dout_p - Dout)))
        needs_col_slice = True
    else:
        Dout_p = Dout
        needs_col_slice = False

    # ---- Node tile: dtype-native sublane multiple, >= 2 grid steps for v7x megacore. ----
    sub = _sublane_multiple(out_dtype)
    tn_eff = max(sub, min(tn, _round_up(pl.cdiv(N, 2), sub)))
    grid_n = pl.cdiv(N, tn_eff)          # no x padding; Pallas masks the partial last block

    itemsize = jnp.dtype(out_dtype).itemsize
    # Double-buffered x/out tiles + resident W'/b' (double-buffered worst case), with headroom.
    vmem_est = (2 * tn_eff * (Din + Dout_p) + 2 * (Din * Dout_p + Dout_p)) * itemsize
    vmem_limit = int(min(max(2 * vmem_est, 32 * 1024 * 1024), 100 * 1024 * 1024))

    cost = pl.CostEstimate(
        flops=2 * N * Din * Dout_p,
        transcendentals=0,
        bytes_accessed=itemsize * (N * Din + Din * Dout_p + Dout_p + N * Dout_p),
    )

    out = pl.pallas_call(
        feature_encoder_kernel,
        out_shape=jax.ShapeDtypeStruct((N, Dout_p), out_dtype),
        grid_spec=pltpu.PrefetchScalarGridSpec(
            num_scalar_prefetch=0,
            grid=(grid_n,),
            in_specs=[
                pl.BlockSpec((tn_eff, Din), lambda i: (i, 0)),    # x tile
                pl.BlockSpec((Din, Dout_p), lambda i: (0, 0)),    # folded W (resident)
                pl.BlockSpec((1, Dout_p), lambda i: (0, 0)),      # folded bias
            ],
            out_specs=pl.BlockSpec((tn_eff, Dout_p), lambda i: (i, 0)),
        ),
        compiler_params=pltpu.CompilerParams(
            dimension_semantics=("parallel",),
            vmem_limit_bytes=vmem_limit,
        ),
        cost_estimate=cost,
    )(x, w_fold, b_fold)

    if needs_col_slice:
        out = out[:, :Dout]
    return out


def reference(x, w, b, gamma, beta, mean, var):
    y = x.astype(jnp.float32) @ w.astype(jnp.float32) + b
    return (y - mean) * jax.lax.rsqrt(var + EPS) * gamma + beta


if __name__ == "__main__":
    key = jax.random.PRNGKey(0)
    N, Din, Dout = 64, 16, 32   # nodes, raw feat dim, cfg.gnn.dim_inner

    kx, kw, kb, kg, kbe, km, kv = jax.random.split(key, 7)
    x = jax.random.normal(kx, (N, Din), dtype=jnp.float32)

    # Deterministic synthetic parameters (Linear node encoder + BN1d).
    w = jax.random.normal(kw, (Din, Dout), dtype=jnp.float32) * 0.1
    b = jax.random.normal(kb, (1, Dout), dtype=jnp.float32) * 0.01
    gamma = 1.0 + 0.1 * jax.random.normal(kg, (1, Dout), dtype=jnp.float32)
    beta = 0.05 * jax.random.normal(kbe, (1, Dout), dtype=jnp.float32)
    running_mean = 0.1 * jax.random.normal(km, (1, Dout), dtype=jnp.float32)
    running_var = jnp.abs(1.0 + 0.1 * jax.random.normal(kv, (1, Dout),
                                                        dtype=jnp.float32))

    ref = reference(x, w, b, gamma, beta, running_mean, running_var)

    # 1) Main f32 path.
    out = feature_encoder(x, w, b, gamma, beta, running_mean, running_var)
    out = jax.block_until_ready(out)
    assert out.shape == (N, Dout)
    assert jnp.allclose(out, ref, atol=1e-4, rtol=1e-4)

    # 2) Ragged N (exercises the masked partial last block, no host padding).
    N2 = 50
    out2 = feature_encoder(x[:N2], w, b, gamma, beta, running_mean, running_var)
    out2 = jax.block_until_ready(out2)
    assert out2.shape == (N2, Dout)
    assert jnp.allclose(out2, ref[:N2], atol=1e-4, rtol=1e-4)

    # 3) bf16 activation path (looser tolerance; fold stays in f32).
    out_bf16 = feature_encoder(x.astype(jnp.bfloat16), w, b, gamma, beta,
                               running_mean, running_var)
    out_bf16 = jax.block_until_ready(out_bf16)
    assert out_bf16.dtype == jnp.bfloat16
    assert jnp.allclose(out_bf16.astype(jnp.float32), ref, atol=5e-2, rtol=5e-2)

    print("KERNEL_OK")
</pallas_src>

<mosaic_0001>
module attributes {stable_mosaic.version = 11 : i64} {
  func.func @feature_encoder_kernel(%arg0: i32, %arg1: memref<32x16xf32, #tpu.memory_space<vmem>>, %arg2: memref<16x32xf32, #tpu.memory_space<vmem>>, %arg3: memref<1x32xf32, #tpu.memory_space<vmem>>, %arg4: memref<32x32xf32, #tpu.memory_space<vmem>>) attributes {dimension_semantics = [#tpu.dimension_semantics<parallel>], iteration_bounds = array<i64: 2>, scalar_prefetch = 0 : i64, scratch_operands = 0 : i64, tpu.core_type = #tpu.core_type<tc>, window_params = [{transform_indices = @transform_0, window_bounds = array<i64: 32, 16>}, {pipeline_mode = #tpu.pipeline_mode<synchronous>, transform_indices = @transform_1, window_bounds = array<i64: 16, 32>}, {pipeline_mode = #tpu.pipeline_mode<synchronous>, transform_indices = @transform_2, window_bounds = array<i64: 1, 32>}, {transform_indices = @transform_3, window_bounds = array<i64: 32, 32>}]} {
    %c0 = arith.constant 0 : index
    %c0_0 = arith.constant 0 : index
    %0 = vector.load %arg1[%c0, %c0_0] : memref<32x16xf32, #tpu.memory_space<vmem>>, vector<32x16xf32>
    %c0_1 = arith.constant 0 : index
    %c0_2 = arith.constant 0 : index
    %1 = vector.load %arg2[%c0_1, %c0_2] : memref<16x32xf32, #tpu.memory_space<vmem>>, vector<16x32xf32>
    %cst = arith.constant dense<0.000000e+00> : vector<32x32xf32>
    %2 = tpu.matmul %0, %1, %cst {dimension_numbers = #tpu.dot_dimension_numbers<[1], [0], [0], [1], [0, 0, 1, 1], [], []>} : vector<32x16xf32>, vector<16x32xf32>, vector<32x32xf32> -> vector<32x32xf32>
    %c0_3 = arith.constant 0 : index
    %c0_4 = arith.constant 0 : index
    %3 = vector.load %arg3[%c0_3, %c0_4] : memref<1x32xf32, #tpu.memory_space<vmem>>, vector<1x32xf32>
    %4 = vector.broadcast %3 : vector<1x32xf32> to vector<32x32xf32>
    %5 = arith.addf %2, %4 : vector<32x32xf32>
    %c0_5 = arith.constant 0 : index
    %c0_6 = arith.constant 0 : index
    %6 = vector.load %arg4[%c0_5, %c0_6] : memref<32x32xf32, #tpu.memory_space<vmem>>, vector<32x32xf32>
    tpu.vector_store %arg4[%c0_5, %c0_6], %5 {strides = array<i32>} : memref<32x32xf32, #tpu.memory_space<vmem>>, vector<32x32xf32>,
    return
  }
  func.func @transform_0(%arg0: i32) -> (i32, i32) {
    %c0_i32 = arith.constant 0 : i32
    %c0_i32_0 = arith.constant 0 : i32
    return %arg0, %c0_i32 : i32, i32
  }
  func.func @transform_1(%arg0: i32) -> (i32, i32) {
    %c0_i32 = arith.constant 0 : i32
    %c0_i32_0 = arith.constant 0 : i32
    %c0_i32_1 = arith.constant 0 : i32
    return %c0_i32, %c0_i32_0 : i32, i32
  }
  func.func @transform_2(%arg0: i32) -> (i32, i32) {
    %c0_i32 = arith.constant 0 : i32
    %c0_i32_0 = arith.constant 0 : i32
    %c0_i32_1 = arith.constant 0 : i32
    return %c0_i32, %c0_i32_0 : i32, i32
  }
  func.func @transform_3(%arg0: i32) -> (i32, i32) {
    %c0_i32 = arith.constant 0 : i32
    %c0_i32_0 = arith.constant 0 : i32
    return %arg0, %c0_i32 : i32, i32
  }
}

</mosaic_0001>

<bundles_post_ra>
// kernel: tpu_custom_call.1
= control target key start
LH: loop header
LB: loop body
LE: loop exit
PB: predicated region body
PF: predicated region fallthrough
CT: control target
= control target key end

     0   :  { %s420_s12 = smov 0   ;;  %s446_s0 = inlined_call_operand.vmem [shape: f32[64,16], index: 0, kind: input, shape index: {}]   ;;  %s447_s1 = inlined_call_operand.vmem [shape: f32[16,32], index: 1, kind: input, shape index: {}]   ;;  %s448_s2 = inlined_call_operand.vmem [shape: f32[1,32], index: 2, kind: input, shape index: {}]   ;;  %s449_s3 = inlined_call_operand.vmem [shape: f32[64,32], index: 3, kind: output, shape index: {}]  }
   0x1 LB: > { %s346_s13 = sadd.s32 4294967295, %s398_s12   ;;  %p350_p0 = scmp.ge.s32.totalorder %s398_s12, 1  ;;  %s398_s12 = sphi %s420_s12, %s13_s12  }
   0x2   : > { %p138_p1 = scmp.lt.s32.totalorder %s398_s12, 3 }
   0x4   : > { %p139_p2 = pnand %p350_p0, %p138_p1 }
   0x5   : > { %v178_v0 = vld [vmem:[%s447_s1] sm:$0xff] (!%p139_p2)  ;;  %v179_v1 = vld [vmem:[%s447_s1 + $0x8] sm:$0xff] (!%p139_p2)  ;;  %s351_s18 = sshll.u32 (!%p139_p2), %s346_s13, 2  ;;  %vm187_vm0 = vcmask (!%p139_p2), 130048   ;;  %vm285_vm1 = vcmask (!%p139_p2), 261120  }
   0x6   : > { %142 = sbr.rel (%p139_p2) target bundleno = 234 (0xea), region = 32  ;;  %v378_v2 = vpack.c.bf16 (!%p139_p2), %v179_v1, %v178_v0  ;;  %p163_p3 = scmp.lt.s32.totalorder (!%p139_p2), %s351_s18, 7  ;;  %v355_v7 = vld [vmem:[%s448_s2] ss:$0 sm:$0xff] (!%p139_p2) }
   0x8   : > { %379 = vmatprep.subr.bf16.mxu0 (!%p139_p2), %v378_v2  ;;  %382 = vmatprep.subr.bf16.mxu1 (!%p139_p2), %v378_v2 }
   0x9   : > { %381 = vmatpush3.bf16.msra.mxu0 (!%p139_p2), %v378_v2  ;;  %383 = vmatpush3.bf16.msra.mxu1 (!%p139_p2), %v378_v2 }
   0xd   : > { %s451_s18 = smov (!%p163_p3, %s351_s18), 7 }
   0xe   : > { %s352_s19 = sshll.u32 %s451_s18, 3 }
   0xf   : > { %s166_s22 = scalar_lea.vmem %s446_s0, %s352_s19  ;;  %s172_s27 = scalar_lea.vmem %s449_s3, %s352_s19 }
  0x10   : > { %v174_v3 = vld [vmem:[%s166_s22] sm:$0xff]  ;;  %v175_v4 = vld [vmem:[%s166_s22 + $0x8] sm:$0xff]  ;;  %v176_v5 = vld [vmem:[%s166_s22 + $0x10] sm:$0xff] }
  0x11   : > { %372 = vmatprep.mubr.msk.f32.mxu0 %vm187_vm0, %v174_v3  ;;  %375 = vmatprep.mubr.msk.f32.mxu1 %vm187_vm0, %v176_v5  ;;  %v177_v6 = vld [vmem:[%s166_s22 + $0x18] sm:$0xff] }
  0x12   : > { %373 = vmatmul.mubr.msk.f32.vlgmr.msra.gmra.mrb[0].mxu0 %vm187_vm0, %v175_v4  ;;  %376 = vmatmul.mubr.msk.f32.vlgmr.msra.gmra.mrb[0].mxu1 %vm187_vm0, %v177_v6 }
  0xe5   : > { %v374_v8 = vpop.f32.mrb[0].mxu0  ;;  %v377_v9 = vpop.f32.mrb[0].mxu1 }
  0xe6   : > { %v266_v10 = vpop.f32.mrb[1].mxu0  ;;  %v276_v11 = vpop.f32.mrb[1].mxu1  ;;  %v272_v14 = vadd.f32 %v374_v8, %v355_v7  ;;  %v282_v15 = vadd.f32 %v377_v9, %v355_v7 }
  0xe7   : > { %v267_v12 = vadd.f32 %v355_v7, %v266_v10  ;;  %v277_v13 = vadd.f32 %v355_v7, %v276_v11 }
  0xe8   : > { %287 = vst.msk [vmem:[%s172_s27 + $0x8] sm:$0xff] %vm285_vm1, %v272_v14  ;;  %289 = vst.msk [vmem:[%s172_s27 + $0x18] sm:$0xff] %vm285_vm1, %v282_v15 }
  0xe9   : > { %286 = vst.msk [vmem:[%s172_s27] sm:$0xff] %vm285_vm1, %v267_v12  ;;  %288 = vst.msk [vmem:[%s172_s27 + $0x10] sm:$0xff] %vm285_vm1, %v277_v13 }
  0xea PF: > { %s13_s12 = sadd.s32 1, %s398_s12  }
  0xeb   : > { %p10_p4 = scmp.ge.s32.totalorder %s13_s12, 4  }
  0xed   :  { %12 = sbr.rel (!%p10_p4) target bundleno = 1 (0x1), region = 62 }

</bundles_post_ra>
